<compile_context>
chip_gen: v5e
topology: v5e:2x2
jax: 0.10.0
libtpu: 0.0.40
codegen_flags: <defaults>
</compile_context>

<pallas_src>
import functools

import jax
import jax.numpy as jnp
from jax import lax
from jax.experimental import pallas as pl
from jax.experimental.pallas import tpu as pltpu

BETA = 100.0      # cfg.NETWORK.BETA (deterministic synthetic config value)
_NEG = -1e30      # large-negative sentinel (avoids inf-inf NaNs)


def _soft_argmax_kernel(x_ref, g_ref, o_ref,
                        m_ref, d_ref, a0_ref, a1_ref, a2_ref,
                        *, beta, tn, n_total, needs_mask):
    # x_ref:  (Bt, C, TN)   heatmap tile
    # g_ref:  (Gb, 3, TN)   grids tile (lane-dense over N); Gb in {1, Bt}
    # o_ref:  (Bt, C, 3)    output (resident across the spatial grid axis)
    # m_ref:  (Bt, C, TN)   per-lane running max          (VMEM scratch)
    # d_ref:  (Bt, C, TN)   per-lane running denominator  (VMEM scratch)
    # a*_ref: (Bt, C, TN)   per-lane running numerators   (VMEM scratch)
    k = pl.program_id(1)
    nk = pl.num_programs(1)
    acc_refs = (a0_ref, a1_ref, a2_ref)

    s_full = beta * x_ref[...].astype(jnp.float32)     # (Bt, C, TN)
    g_full = g_ref[...].astype(jnp.float32)            # (Gb, 3, TN)

    def first_step(s, g):
        # First tile of the stream: p == 1 for every lane, so no exp is needed.
        m_ref[...] = s
        d_ref[...] = jnp.ones_like(s)
        for c in range(3):
            acc_refs[c][...] = jnp.broadcast_to(g[:, c:c + 1, :], s.shape)

    def online_step(s, g):
        # Per-lane online softmax update; pure VPU + one EUP exp per element.
        m_old = m_ref[...]
        diff = s - m_old
        e = jnp.exp(-jnp.abs(diff))         # = exp(min(s,m_old) - max(s,m_old))
        ge = diff >= 0.0
        alpha = jnp.where(ge, e, 1.0)       # rescale of old accumulators
        p = jnp.where(ge, 1.0, e)           # weight of the new element
        m_ref[...] = jnp.maximum(m_old, s)
        d_ref[...] = alpha * d_ref[...] + p
        for c in range(3):
            acc_refs[c][...] = alpha * acc_refs[c][...] + p * g[:, c:c + 1, :]

    @pl.when(k == 0)
    def _():
        first_step(s_full, g_full)

    if needs_mask:
        # Only the last tile is ragged; full tiles pay no iota/select.
        @pl.when((k > 0) & (k < nk - 1))
        def _():
            online_step(s_full, g_full)

        @pl.when(k == nk - 1)
        def _():
            col = lax.broadcasted_iota(jnp.int32, s_full.shape, 2)
            s = jnp.where(k * tn + col < n_total, s_full, _NEG)
            gcol = lax.broadcasted_iota(jnp.int32, g_full.shape, 2)
            g = jnp.where(k * tn + gcol < n_total, g_full, 0.0)  # guard 0*inf
            online_step(s, g)
    else:
        @pl.when(k > 0)
        def _():
            online_step(s_full, g_full)

    @pl.when(k == nk - 1)
    def _finalize():
        # Single set of cross-lane (XLU) reductions for the whole stream.
        m = m_ref[...]
        mx = jnp.max(m, axis=-1, keepdims=True)          # (Bt, C, 1)
        w = jnp.exp(m - mx)                              # (Bt, C, TN)
        d = jnp.sum(w * d_ref[...], axis=-1, keepdims=True)
        inv = pl.reciprocal(d, approx=True)              # EUP slot
        inv = inv * (2.0 - d * inv)                      # one Newton step
        nums = [jnp.sum(w * acc_refs[c][...], axis=-1, keepdims=True)
                for c in range(3)]
        out = jnp.concatenate(nums, axis=-1) * inv       # (Bt, C, 3)
        o_ref[...] = out.astype(o_ref.dtype)


def _vmem_plan():
    """Chip-aware (budget_bytes, vmem_limit_bytes)."""
    try:
        cap = int(pltpu.get_tpu_info().vmem_capacity_bytes)
    except Exception:
        cap = 64 << 20                      # assume the smallest (v7x per-TC)
    vmem_limit = min((cap * 3) // 4, 48 << 20)   # > 16 MiB v5e default, < v7x 64 MiB
    budget = vmem_limit // 2                     # working-set target
    return budget, vmem_limit


def _choose_bt(B, C, max_rows=64):
    """Batches fused per grid step.

    Keeps the batch ('parallel') grid axis at >= 2 steps when B > 1 so both
    v7x TensorCores get work, and keeps Bt*C small enough for the per-lane
    VPU accumulators."""
    if B == 1:
        return 1
    best = 1
    for bt in range(1, B // 2 + 1):
        if B % bt:
            continue
        if bt * C > max_rows:
            break
        best = bt
    return best


def _choose_tn(N, bt, C, gb, x_itemsize, budget_bytes):
    """Spatial tile width: whole N if it fits, else a multiple-of-128 tile,
    preferring a divisor of N (no remainder tile / no masking)."""
    c_pad = ((C + 7) // 8) * 8                     # sublane padding of (C, TN) slabs
    per_col = (
        2 * bt * c_pad * x_itemsize                # x tile, double buffered
        + 2 * gb * 8 * 4                           # grids tile (3 rows pad to 8), x2
        + 5 * bt * c_pad * 4                       # m, d, 3 numerator accumulators
        + 4 * bt * c_pad * 4                       # in-kernel f32 temporaries
    )
    tn = budget_bytes // max(per_col, 1)
    if tn >= N:
        return N
    tn = max((tn // 128) * 128, 128)
    best_div = 0
    d = 128
    while d <= tn:                                 # largest 128-multiple divisor of N
        if N % d == 0:
            best_div = d
        d += 128
    return best_div if best_div else tn


def soft_argmax(x, grids, *, beta=BETA, block_bt=None, block_n=None,
                stream_dtype=None):
    """x: (B, C, *spatial); grids: (B, N, 3) (or (N, 3) / (1, N, 3) batch-shared).
    Returns (B, C, 3), matching SoftArgmaxLayer.forward."""
    B, C = x.shape[0], x.shape[1]
    N = 1
    for d in x.shape[2:]:
        N *= d
    out_dtype = x.dtype

    x_flat = x.reshape(B, C, N)
    if stream_dtype is not None:
        # Optional bandwidth saving (e.g. bf16 on v5e/v6e); compute stays f32.
        x_flat = x_flat.astype(stream_dtype)

    if grids.ndim == 2:
        grids = grids[None]
    gB = grids.shape[0]
    assert grids.shape == (gB, N, 3) and gB in (1, B), (grids.shape, B, N)
    grids_t = jnp.transpose(grids, (0, 2, 1))          # (gB, 3, N) lane-dense
    shared = (gB == 1)

    budget, vmem_limit = _vmem_plan()

    Bt = block_bt if block_bt is not None else _choose_bt(B, C)
    assert B % Bt == 0, (B, Bt)
    Gb = 1 if shared else Bt

    if block_n is not None:
        TN = min(block_n, N)
    else:
        TN = _choose_tn(N, Bt, C, Gb, x_flat.dtype.itemsize, budget)
    assert TN == N or TN % 128 == 0, TN
    n_blocks = pl.cdiv(N, TN)
    needs_mask = (N % TN) != 0
    assert (not needs_mask) or n_blocks >= 2

    kernel = functools.partial(
        _soft_argmax_kernel,
        beta=float(beta), tn=TN, n_total=N, needs_mask=needs_mask)

    if shared:
        g_index = lambda b, k: (0, 0, k)
    else:
        g_index = lambda b, k: (b, 0, k)

    grid_spec = pltpu.PrefetchScalarGridSpec(
        num_scalar_prefetch=0,
        grid=(B // Bt, n_blocks),
        in_specs=[
            pl.BlockSpec((Bt, C, TN), lambda b, k: (b, 0, k)),
            pl.BlockSpec((Gb, 3, TN), g_index),
        ],
        out_specs=pl.BlockSpec((Bt, C, 3), lambda b, k: (b, 0, 0)),
        scratch_shapes=[
            pltpu.VMEM((Bt, C, TN), jnp.float32),   # running max (per lane)
            pltpu.VMEM((Bt, C, TN), jnp.float32),   # running denom (per lane)
            pltpu.VMEM((Bt, C, TN), jnp.float32),   # numerator x
            pltpu.VMEM((Bt, C, TN), jnp.float32),   # numerator y
            pltpu.VMEM((Bt, C, TN), jnp.float32),   # numerator z
        ],
    )

    return pl.pallas_call(
        kernel,
        out_shape=jax.ShapeDtypeStruct((B, C, 3), out_dtype),
        grid_spec=grid_spec,
        compiler_params=pltpu.CompilerParams(
            dimension_semantics=("parallel", "arbitrary"),
            vmem_limit_bytes=int(vmem_limit)),
    )(x_flat, grids_t)


def _reference(x, grids, beta=BETA):
    B, C = x.shape[0], x.shape[1]
    if grids.ndim == 2:
        grids = grids[None]
    N = grids.shape[1]
    xf = x.reshape(B, C, N, 1).astype(jnp.float32)
    p = jax.nn.softmax(beta * xf, axis=2)                        # (B, C, N, 1)
    g = grids[:, None, :, :].astype(jnp.float32)                 # (gB, 1, N, 3)
    return jnp.sum(p * g, axis=2)                                # (B, C, 3)


if __name__ == "__main__":
    key = jax.random.PRNGKey(0)
    k1, k2, k3, k4, k5, k6 = jax.random.split(key, 6)

    # --- Test 1: small NCHW heatmaps (single spatial tile path) ---
    B, C, H, W = 2, 4, 16, 16
    N = H * W
    x = jax.random.normal(k1, (B, C, H, W), dtype=jnp.float32)
    grids = jax.random.uniform(k2, (B, N, 3), dtype=jnp.float32,
                               minval=-1.0, maxval=1.0)
    out = jax.block_until_ready(soft_argmax(x, grids))
    ref = _reference(x, grids)
    assert out.shape == (B, C, 3), out.shape
    err = float(jnp.max(jnp.abs(out - ref)))
    assert err < 1e-4, err

    # --- Test 2: streamed spatial axis with a masked remainder tile ---
    B2, C2, H2, W2 = 2, 4, 16, 19       # N = 304 -> tiles of 128 + remainder 48
    N2 = H2 * W2
    x2 = jax.random.normal(k3, (B2, C2, H2, W2), dtype=jnp.float32)
    grids2 = jax.random.uniform(k4, (B2, N2, 3), dtype=jnp.float32,
                                minval=-1.0, maxval=1.0)
    out2 = jax.block_until_ready(soft_argmax(x2, grids2, block_n=128))
    ref2 = _reference(x2, grids2)
    err2 = float(jnp.max(jnp.abs(out2 - ref2)))
    assert err2 < 1e-4, err2

    # --- Test 3: batch-shared grids (read once, not per batch) ---
    B3, C3, H3, W3 = 3, 5, 8, 8
    N3 = H3 * W3
    x3 = jax.random.normal(k5, (B3, C3, H3, W3), dtype=jnp.float32)
    grids3 = jax.random.uniform(k6, (N3, 3), dtype=jnp.float32,
                                minval=-1.0, maxval=1.0)
    out3 = jax.block_until_ready(soft_argmax(x3, grids3))
    ref3 = _reference(x3, grids3)
    err3 = float(jnp.max(jnp.abs(out3 - ref3)))
    assert err3 < 1e-4, err3

    # TODO(synk): stream_dtype=jnp.bfloat16 halves x HBM traffic on v5e/v6e but
    # beta=100 amplifies bf16 quantization beyond the 1e-4 tolerance; validate
    # per-model before enabling.

    print("KERNEL_OK")
</pallas_src>

<mosaic_0001>
module attributes {stable_mosaic.version = 11 : i64} {
  func.func @_soft_argmax_kernel(%arg0: i32, %arg1: i32, %arg2: memref<1x4x256xf32, #tpu.memory_space<vmem>>, %arg3: memref<1x3x256xf32, #tpu.memory_space<vmem>>, %arg4: memref<1x4x3xf32, #tpu.memory_space<vmem>>, %arg5: memref<1x4x256xf32, #tpu.memory_space<vmem>>, %arg6: memref<1x4x256xf32, #tpu.memory_space<vmem>>, %arg7: memref<1x4x256xf32, #tpu.memory_space<vmem>>, %arg8: memref<1x4x256xf32, #tpu.memory_space<vmem>>, %arg9: memref<1x4x256xf32, #tpu.memory_space<vmem>>) attributes {dimension_semantics = [#tpu.dimension_semantics<parallel>, #tpu.dimension_semantics<arbitrary>], iteration_bounds = array<i64: 2, 1>, scalar_prefetch = 0 : i64, scratch_operands = 5 : i64, tpu.core_type = #tpu.core_type<tc>, window_params = [{transform_indices = @transform_0, window_bounds = array<i64: 1, 4, 256>}, {transform_indices = @transform_1, window_bounds = array<i64: 1, 3, 256>}, {transform_indices = @transform_2, window_bounds = array<i64: 1, 4, 3>}]} {
    %c0 = arith.constant 0 : index
    %c0_0 = arith.constant 0 : index
    %c0_1 = arith.constant 0 : index
    %0 = vector.load %arg2[%c0, %c0_0, %c0_1] : memref<1x4x256xf32, #tpu.memory_space<vmem>>, vector<1x4x256xf32>
    %cst = arith.constant 1.000000e+02 : f32
    %1 = vector.broadcast %cst : f32 to vector<1x4x256xf32>
    %2 = arith.mulf %1, %0 : vector<1x4x256xf32>
    %c0_2 = arith.constant 0 : index
    %c0_3 = arith.constant 0 : index
    %c0_4 = arith.constant 0 : index
    %3 = vector.load %arg3[%c0_2, %c0_3, %c0_4] : memref<1x3x256xf32, #tpu.memory_space<vmem>>, vector<1x3x256xf32>
    %c0_i32 = arith.constant 0 : i32
    %4 = arith.cmpi eq, %arg1, %c0_i32 : i32
    %5 = arith.extui %4 : i1 to i32
    %c0_i32_5 = arith.constant 0 : i32
    %6 = arith.cmpi ne, %5, %c0_i32_5 : i32
    scf.if %6 {
      %c0_10 = arith.constant 0 : index
      %c0_11 = arith.constant 0 : index
      %c0_12 = arith.constant 0 : index
      %13 = vector.load %arg5[%c0_10, %c0_11, %c0_12] : memref<1x4x256xf32, #tpu.memory_space<vmem>>, vector<1x4x256xf32>
      tpu.vector_store %arg5[%c0_10, %c0_11, %c0_12], %2 {strides = array<i32>} : memref<1x4x256xf32, #tpu.memory_space<vmem>>, vector<1x4x256xf32>,
      %cst_13 = arith.constant 1.000000e+00 : f32
      %14 = vector.broadcast %cst_13 : f32 to vector<1x4x256xf32>
      %c0_14 = arith.constant 0 : index
      %c0_15 = arith.constant 0 : index
      %c0_16 = arith.constant 0 : index
      %15 = vector.load %arg6[%c0_14, %c0_15, %c0_16] : memref<1x4x256xf32, #tpu.memory_space<vmem>>, vector<1x4x256xf32>
      tpu.vector_store %arg6[%c0_14, %c0_15, %c0_16], %14 {strides = array<i32>} : memref<1x4x256xf32, #tpu.memory_space<vmem>>, vector<1x4x256xf32>,
      %16 = vector.extract_strided_slice %3 {offsets = [0, 0, 0], sizes = [1, 1, 256], strides = [1, 1, 1]} : vector<1x3x256xf32> to vector<1x1x256xf32>
      %17 = vector.shape_cast %16 : vector<1x1x256xf32> to vector<1x1x256xf32>
      %18 = vector.broadcast %17 : vector<1x1x256xf32> to vector<1x4x256xf32>
      %c0_17 = arith.constant 0 : index
      %c0_18 = arith.constant 0 : index
      %c0_19 = arith.constant 0 : index
      %19 = vector.load %arg7[%c0_17, %c0_18, %c0_19] : memref<1x4x256xf32, #tpu.memory_space<vmem>>, vector<1x4x256xf32>
      tpu.vector_store %arg7[%c0_17, %c0_18, %c0_19], %18 {strides = array<i32>} : memref<1x4x256xf32, #tpu.memory_space<vmem>>, vector<1x4x256xf32>,
      %20 = vector.extract_strided_slice %3 {offsets = [0, 1, 0], sizes = [1, 1, 256], strides = [1, 1, 1]} : vector<1x3x256xf32> to vector<1x1x256xf32>
      %21 = vector.shape_cast %20 : vector<1x1x256xf32> to vector<1x1x256xf32>
      %22 = vector.broadcast %21 : vector<1x1x256xf32> to vector<1x4x256xf32>
      %c0_20 = arith.constant 0 : index
      %c0_21 = arith.constant 0 : index
      %c0_22 = arith.constant 0 : index
      %23 = vector.load %arg8[%c0_20, %c0_21, %c0_22] : memref<1x4x256xf32, #tpu.memory_space<vmem>>, vector<1x4x256xf32>
      tpu.vector_store %arg8[%c0_20, %c0_21, %c0_22], %22 {strides = array<i32>} : memref<1x4x256xf32, #tpu.memory_space<vmem>>, vector<1x4x256xf32>,
      %24 = vector.extract_strided_slice %3 {offsets = [0, 2, 0], sizes = [1, 1, 256], strides = [1, 1, 1]} : vector<1x3x256xf32> to vector<1x1x256xf32>
      %25 = vector.shape_cast %24 : vector<1x1x256xf32> to vector<1x1x256xf32>
      %26 = vector.broadcast %25 : vector<1x1x256xf32> to vector<1x4x256xf32>
      %c0_23 = arith.constant 0 : index
      %c0_24 = arith.constant 0 : index
      %c0_25 = arith.constant 0 : index
      %27 = vector.load %arg9[%c0_23, %c0_24, %c0_25] : memref<1x4x256xf32, #tpu.memory_space<vmem>>, vector<1x4x256xf32>
      tpu.vector_store %arg9[%c0_23, %c0_24, %c0_25], %26 {strides = array<i32>} : memref<1x4x256xf32, #tpu.memory_space<vmem>>, vector<1x4x256xf32>,
    } else {
    }
    %c0_i32_6 = arith.constant 0 : i32
    %7 = arith.cmpi sgt, %arg1, %c0_i32_6 : i32
    %8 = arith.extui %7 : i1 to i32
    %c0_i32_7 = arith.constant 0 : i32
    %9 = arith.cmpi ne, %8, %c0_i32_7 : i32
    scf.if %9 {
      %c0_10 = arith.constant 0 : index
      %c0_11 = arith.constant 0 : index
      %c0_12 = arith.constant 0 : index
      %13 = vector.load %arg5[%c0_10, %c0_11, %c0_12] : memref<1x4x256xf32, #tpu.memory_space<vmem>>, vector<1x4x256xf32>
      %14 = arith.subf %2, %13 : vector<1x4x256xf32>
      %15 = math.absf %14 : vector<1x4x256xf32>
      %cst_13 = arith.constant 0.000000e+00 : f32
      %16 = vector.broadcast %cst_13 : f32 to vector<1x4x256xf32>
      %17 = arith.subf %16, %15 : vector<1x4x256xf32>
      %18 = math.exp %17 : vector<1x4x256xf32>
      %cst_14 = arith.constant 0.000000e+00 : f32
      %19 = vector.broadcast %cst_14 : f32 to vector<1x4x256xf32>
      %20 = arith.cmpf oge, %14, %19 : vector<1x4x256xf32>
      %cst_15 = arith.constant 1.000000e+00 : f32
      %21 = vector.broadcast %cst_15 : f32 to vector<1x4x256xf32>
      %22 = arith.select %20, %18, %21 : vector<1x4x256xi1>, vector<1x4x256xf32>
      %cst_16 = arith.constant 1.000000e+00 : f32
      %23 = vector.broadcast %cst_16 : f32 to vector<1x4x256xf32>
      %24 = arith.select %20, %23, %18 : vector<1x4x256xi1>, vector<1x4x256xf32>
      %25 = arith.maximumf %13, %2 : vector<1x4x256xf32>
      %c0_17 = arith.constant 0 : index
      %c0_18 = arith.constant 0 : index
      %c0_19 = arith.constant 0 : index
      %26 = vector.load %arg5[%c0_17, %c0_18, %c0_19] : memref<1x4x256xf32, #tpu.memory_space<vmem>>, vector<1x4x256xf32>
      tpu.vector_store %arg5[%c0_17, %c0_18, %c0_19], %25 {strides = array<i32>} : memref<1x4x256xf32, #tpu.memory_space<vmem>>, vector<1x4x256xf32>,
      %c0_20 = arith.constant 0 : index
      %c0_21 = arith.constant 0 : index
      %c0_22 = arith.constant 0 : index
      %27 = vector.load %arg6[%c0_20, %c0_21, %c0_22] : memref<1x4x256xf32, #tpu.memory_space<vmem>>, vector<1x4x256xf32>
      %28 = arith.mulf %22, %27 : vector<1x4x256xf32>
      %29 = arith.addf %28, %24 : vector<1x4x256xf32>
      %c0_23 = arith.constant 0 : index
      %c0_24 = arith.constant 0 : index
      %c0_25 = arith.constant 0 : index
      %30 = vector.load %arg6[%c0_23, %c0_24, %c0_25] : memref<1x4x256xf32, #tpu.memory_space<vmem>>, vector<1x4x256xf32>
      tpu.vector_store %arg6[%c0_23, %c0_24, %c0_25], %29 {strides = array<i32>} : memref<1x4x256xf32, #tpu.memory_space<vmem>>, vector<1x4x256xf32>,
      %c0_26 = arith.constant 0 : index
      %c0_27 = arith.constant 0 : index
      %c0_28 = arith.constant 0 : index
      %31 = vector.load %arg7[%c0_26, %c0_27, %c0_28] : memref<1x4x256xf32, #tpu.memory_space<vmem>>, vector<1x4x256xf32>
      %32 = arith.mulf %22, %31 : vector<1x4x256xf32>
      %33 = vector.extract_strided_slice %3 {offsets = [0, 0, 0], sizes = [1, 1, 256], strides = [1, 1, 1]} : vector<1x3x256xf32> to vector<1x1x256xf32>
      %34 = vector.broadcast %33 : vector<1x1x256xf32> to vector<1x4x256xf32>
      %35 = arith.mulf %24, %34 : vector<1x4x256xf32>
      %36 = arith.addf %32, %35 : vector<1x4x256xf32>
      %c0_29 = arith.constant 0 : index
      %c0_30 = arith.constant 0 : index
      %c0_31 = arith.constant 0 : index
      %37 = vector.load %arg7[%c0_29, %c0_30, %c0_31] : memref<1x4x256xf32, #tpu.memory_space<vmem>>, vector<1x4x256xf32>
      tpu.vector_store %arg7[%c0_29, %c0_30, %c0_31], %36 {strides = array<i32>} : memref<1x4x256xf32, #tpu.memory_space<vmem>>, vector<1x4x256xf32>,
      %c0_32 = arith.constant 0 : index
      %c0_33 = arith.constant 0 : index
      %c0_34 = arith.constant 0 : index
      %38 = vector.load %arg8[%c0_32, %c0_33, %c0_34] : memref<1x4x256xf32, #tpu.memory_space<vmem>>, vector<1x4x256xf32>
      %39 = arith.mulf %22, %38 : vector<1x4x256xf32>
      %40 = vector.extract_strided_slice %3 {offsets = [0, 1, 0], sizes = [1, 1, 256], strides = [1, 1, 1]} : vector<1x3x256xf32> to vector<1x1x256xf32>
      %41 = vector.broadcast %40 : vector<1x1x256xf32> to vector<1x4x256xf32>
      %42 = arith.mulf %24, %41 : vector<1x4x256xf32>
      %43 = arith.addf %39, %42 : vector<1x4x256xf32>
      %c0_35 = arith.constant 0 : index
      %c0_36 = arith.constant 0 : index
      %c0_37 = arith.constant 0 : index
      %44 = vector.load %arg8[%c0_35, %c0_36, %c0_37] : memref<1x4x256xf32, #tpu.memory_space<vmem>>, vector<1x4x256xf32>
      tpu.vector_store %arg8[%c0_35, %c0_36, %c0_37], %43 {strides = array<i32>} : memref<1x4x256xf32, #tpu.memory_space<vmem>>, vector<1x4x256xf32>,
      %c0_38 = arith.constant 0 : index
      %c0_39 = arith.constant 0 : index
      %c0_40 = arith.constant 0 : index
      %45 = vector.load %arg9[%c0_38, %c0_39, %c0_40] : memref<1x4x256xf32, #tpu.memory_space<vmem>>, vector<1x4x256xf32>
      %46 = arith.mulf %22, %45 : vector<1x4x256xf32>
      %47 = vector.extract_strided_slice %3 {offsets = [0, 2, 0], sizes = [1, 1, 256], strides = [1, 1, 1]} : vector<1x3x256xf32> to vector<1x1x256xf32>
      %48 = vector.broadcast %47 : vector<1x1x256xf32> to vector<1x4x256xf32>
      %49 = arith.mulf %24, %48 : vector<1x4x256xf32>
      %50 = arith.addf %46, %49 : vector<1x4x256xf32>
      %c0_41 = arith.constant 0 : index
      %c0_42 = arith.constant 0 : index
      %c0_43 = arith.constant 0 : index
      %51 = vector.load %arg9[%c0_41, %c0_42, %c0_43] : memref<1x4x256xf32, #tpu.memory_space<vmem>>, vector<1x4x256xf32>
      tpu.vector_store %arg9[%c0_41, %c0_42, %c0_43], %50 {strides = array<i32>} : memref<1x4x256xf32, #tpu.memory_space<vmem>>, vector<1x4x256xf32>,
    } else {
    }
    %c0_i32_8 = arith.constant 0 : i32
    %10 = arith.cmpi eq, %arg1, %c0_i32_8 : i32
    %11 = arith.extui %10 : i1 to i32
    %c0_i32_9 = arith.constant 0 : i32
    %12 = arith.cmpi ne, %11, %c0_i32_9 : i32
    scf.if %12 {
      %c0_10 = arith.constant 0 : index
      %c0_11 = arith.constant 0 : index
      %c0_12 = arith.constant 0 : index
      %13 = vector.load %arg5[%c0_10, %c0_11, %c0_12] : memref<1x4x256xf32, #tpu.memory_space<vmem>>, vector<1x4x256xf32>
      %cst_13 = arith.constant dense<0xFF800000> : vector<1x4xf32>
      %14 = vector.multi_reduction <maximumf>, %13, %cst_13 [2] : vector<1x4x256xf32> to vector<1x4xf32>
      %15 = vector.shape_cast %14 : vector<1x4xf32> to vector<1x4x1xf32>
      %16 = vector.broadcast %15 : vector<1x4x1xf32> to vector<1x4x256xf32>
      %17 = arith.subf %13, %16 : vector<1x4x256xf32>
      %18 = math.exp %17 : vector<1x4x256xf32>
      %c0_14 = arith.constant 0 : index
      %c0_15 = arith.constant 0 : index
      %c0_16 = arith.constant 0 : index
      %19 = vector.load %arg6[%c0_14, %c0_15, %c0_16] : memref<1x4x256xf32, #tpu.memory_space<vmem>>, vector<1x4x256xf32>
      %20 = arith.mulf %18, %19 : vector<1x4x256xf32>
      %cst_17 = arith.constant dense<0.000000e+00> : vector<1x4xf32>
      %21 = vector.multi_reduction <add>, %20, %cst_17 [2] : vector<1x4x256xf32> to vector<1x4xf32>
      %22 = vector.shape_cast %21 : vector<1x4xf32> to vector<1x4x1xf32>
      %23 = tpu.reciprocal %22 {approx = true} : vector<1x4x1xf32> -> vector<1x4x1xf32>
      %24 = arith.mulf %22, %23 : vector<1x4x1xf32>
      %cst_18 = arith.constant 2.000000e+00 : f32
      %25 = vector.broadcast %cst_18 : f32 to vector<1x4x1xf32>
      %26 = arith.subf %25, %24 : vector<1x4x1xf32>
      %27 = arith.mulf %23, %26 : vector<1x4x1xf32>
      %c0_19 = arith.constant 0 : index
      %c0_20 = arith.constant 0 : index
      %c0_21 = arith.constant 0 : index
      %28 = vector.load %arg7[%c0_19, %c0_20, %c0_21] : memref<1x4x256xf32, #tpu.memory_space<vmem>>, vector<1x4x256xf32>
      %29 = arith.mulf %18, %28 : vector<1x4x256xf32>
      %cst_22 = arith.constant dense<0.000000e+00> : vector<1x4xf32>
      %30 = vector.multi_reduction <add>, %29, %cst_22 [2] : vector<1x4x256xf32> to vector<1x4xf32>
      %31 = vector.shape_cast %30 : vector<1x4xf32> to vector<1x4x1xf32>
      %c0_23 = arith.constant 0 : index
      %c0_24 = arith.constant 0 : index
      %c0_25 = arith.constant 0 : index
      %32 = vector.load %arg8[%c0_23, %c0_24, %c0_25] : memref<1x4x256xf32, #tpu.memory_space<vmem>>, vector<1x4x256xf32>
      %33 = arith.mulf %18, %32 : vector<1x4x256xf32>
      %cst_26 = arith.constant dense<0.000000e+00> : vector<1x4xf32>
      %34 = vector.multi_reduction <add>, %33, %cst_26 [2] : vector<1x4x256xf32> to vector<1x4xf32>
      %35 = vector.shape_cast %34 : vector<1x4xf32> to vector<1x4x1xf32>
      %c0_27 = arith.constant 0 : index
      %c0_28 = arith.constant 0 : index
      %c0_29 = arith.constant 0 : index
      %36 = vector.load %arg9[%c0_27, %c0_28, %c0_29] : memref<1x4x256xf32, #tpu.memory_space<vmem>>, vector<1x4x256xf32>
      %37 = arith.mulf %18, %36 : vector<1x4x256xf32>
      %cst_30 = arith.constant dense<0.000000e+00> : vector<1x4xf32>
      %38 = vector.multi_reduction <add>, %37, %cst_30 [2] : vector<1x4x256xf32> to vector<1x4xf32>
      %39 = vector.shape_cast %38 : vector<1x4xf32> to vector<1x4x1xf32>
      %40 = tpu.concatenate %31, %35, %39 in 2 : vector<1x4x1xf32>, vector<1x4x1xf32>, vector<1x4x1xf32> -> vector<1x4x3xf32>
      %41 = vector.broadcast %27 : vector<1x4x1xf32> to vector<1x4x3xf32>
      %42 = arith.mulf %40, %41 : vector<1x4x3xf32>
      %c0_31 = arith.constant 0 : index
      %c0_32 = arith.constant 0 : index
      %c0_33 = arith.constant 0 : index
      %43 = vector.load %arg4[%c0_31, %c0_32, %c0_33] : memref<1x4x3xf32, #tpu.memory_space<vmem>>, vector<1x4x3xf32>
      tpu.vector_store %arg4[%c0_31, %c0_32, %c0_33], %42 {strides = array<i32>} : memref<1x4x3xf32, #tpu.memory_space<vmem>>, vector<1x4x3xf32>,
    } else {
    }
    return
  }
  func.func @transform_0(%arg0: i32, %arg1: i32) -> (i32, i32, i32) {
    %c0_i32 = arith.constant 0 : i32
    %c0_i32_0 = arith.constant 0 : i32
    return %arg0, %c0_i32, %arg1 : i32, i32, i32
  }
  func.func @transform_1(%arg0: i32, %arg1: i32) -> (i32, i32, i32) {
    %c0_i32 = arith.constant 0 : i32
    %c0_i32_0 = arith.constant 0 : i32
    return %arg0, %c0_i32, %arg1 : i32, i32, i32
  }
  func.func @transform_2(%arg0: i32, %arg1: i32) -> (i32, i32, i32) {
    %c0_i32 = arith.constant 0 : i32
    %c0_i32_0 = arith.constant 0 : i32
    %c0_i32_1 = arith.constant 0 : i32
    return %arg0, %c0_i32, %c0_i32_0 : i32, i32, i32
  }
}

</mosaic_0001>

<bundles_post_ra>
// kernel: tpu_custom_call.1
= control target key start
LH: loop header
LB: loop body
LE: loop exit
PB: predicated region body
PF: predicated region fallthrough
CT: control target
= control target key end

     0   :  { %s578_s9 = smov 0   ;;  %s580_s10 = smov 0   ;;  %s631_s0 = inlined_call_operand.vmem [shape: f32[2,4,256], index: 0, kind: input, shape index: {}]   ;;  %s632_s1 = inlined_call_operand.vmem [shape: f32[2,3,256], index: 1, kind: input, shape index: {}]   ;;  %s633_s2 = inlined_call_operand.vmem [shape: f32[2,4,3], index: 2, kind: output, shape index: {}]  }
   0x1   :  { %s582_s11 = smov 0  }
   0x2 LB: > { %s24_s12 = sadd.s32 1, %s556_s10  ;;  %p499_p0 = scmp.ge.s32.totalorder %s560_s11, 1  ;;  %s560_s11 = sphi %s582_s11, %s12_s11   ;;  %s556_s10 = sphi %s580_s10, %s635_s10   ;;  %s552_s9 = sphi %s578_s9, %s634_s9  }
   0x3   : > { %p26_p1 = scmp.ge.s32.totalorder %s24_s12, 2  ;;  %p148_p2 = scmp.lt.s32.totalorder %s560_s11, 3 }
   0x5   : > { %s637_s12 = smov (%p26_p1, %s24_s12), 0  ;;  %p149_p3 = pnand %p499_p0, %p148_p2 }
   0x6   : > { %p183_p4 = scmp.lt.s32.totalorder (!%p149_p3), %s552_s9, 1 }
   0x7   : > { %152 = sbr.rel (%p149_p3) target bundleno = 313 (0x139), region = 28 }
   0xc   : > { %s639_s9 = smov (!%p183_p4, %s552_s9), 1  ;;  %vm225_vm0 = vcmask 1043456   ;;  %v562_v7 = vmov 839922192   ;;  %vm403_vm1 = vcmask 7168   ;;  %vm405_vm2 = vcmask 15360  }
   0xd   : > { %s507_s13 = sshll.u32 %s639_s9, 3  ;;  %v340_v8 = vunpack.c.l.s4 %v562_v7  ;;  %s504_s20 = sshll.u32 %s639_s9, 2  ;;  %vm408_vm3 = vcmask 19456  }
   0xe   : > { %s190_s16 = scalar_lea.vmem %s631_s0, %s507_s13  ;;  %s200_s19 = scalar_lea.vmem %s632_s1, %s507_s13 }
   0xf   : > { %v206_v0 = vld [vmem:[%s190_s16] sm:$0xff]  ;;  %v341_v9 = vunpack.c.0.s8 %v340_v8  ;;  %s205_s23 = scalar_lea.vmem %s633_s2, %s504_s20 }
  0x10   : > { %v207_v1 = vmul.f32 100.0, %v206_v0  ;;  %v208_v12 = vld [vmem:[%s200_s19] sm:$0x77] }
  0x11   : > { %v217_v14 = vperm.slane %v208_v12, 4  ;;  %v216_v16 = vperm.slane %v208_v12, 0  ;;  %v230_v18 = vperm.slane %v208_v12, 5  ;;  %v229_v22 = vperm.slane %v208_v12, 1 }
  0x12   : > { %327 = vst [vmem:[#allocation1] ss:$2 sm:$0xff] %v207_v1  ;;  %v242_v27 = vperm.slane %v208_v12, 6  ;;  %v241_v34 = vperm.slane %v208_v12, 2 }
  0x13   : > { %v221_v17 = vperm.slane %v217_v14, 0  ;;  %v220_v20 = vperm.slane %v216_v16, 0  ;;  %v234_v23 = vperm.slane %v230_v18, 1  ;;  %v233_v25 = vperm.slane %v229_v22, 1 }
  0x14   : > { %v246_v35 = vperm.slane %v242_v27, 2  ;;  %v245_v37 = vperm.slane %v241_v34, 2 }
  0x15   : > { %v224_v21 = vrot.slane %v221_v17, 4  ;;  %v237_v26 = vrot.slane %v234_v23, 4 }
  0x16   : > { %v249_v38 = vrot.slane %v246_v35, 4 }
  0x17   : > { %v226_v24 = vsel %vm225_vm0, %v220_v20, %v224_v21  ;;  %v238_v36 = vsel %vm225_vm0, %v233_v25, %v237_v26 }
  0x18   : > { %v250_v45 = vsel %vm225_vm0, %v245_v37, %v249_v38 }
  0x19   : > { %v328_v2 = vld.sshfl [vmem:[#allocation1] sm:$0xff pattern:$0x75316420]  ;;  %v329_v3 = vld.sshfl [vmem:[#allocation1 + $0x8] sm:$0xff pattern:$0x75316420] }
  0x1a   : > { %v333_v4 = vsel %vm225_vm0, %v328_v2, -inf  ;;  %v334_v5 = vsel %vm225_vm0, %v329_v3, -inf }
  0x1b   : > { %v335_v6 = vmax.f32 %v333_v4, %v334_v5 }
  0x1d   : > { %336 = vmax.xlane.f32.xlu0 %v335_v6 }
  0x90   : > { %v337_v10 = vpop.xlane.xlu0 %336 }
  0x91   : > { %v342_v11 = vperm.slane %v337_v10, %v341_v9 }
  0x93   : > { %v344_v13 = vsub.f32 %v207_v1, %v342_v11 }
  0x95   : > { %v345_v15 = vmul.f32 1.442695, %v344_v13 }
  0x97   : > { %534 = vpow2.f32 %v345_v15 }
  0x9d   : > { %v535_v19 = vpop.eup %534 }
  0x9e   : > { %350 = vst [vmem:[#allocation1] ss:$2 sm:$0xff] %v535_v19  ;;  %v365_v28 = vmul.f32 %v535_v19, %v226_v24  ;;  %v378_v39 = vmul.f32 %v535_v19, %v238_v36  ;;  %v391_v46 = vmul.f32 %v535_v19, %v250_v45 }
  0xa5   : > { %v351_v29 = vld.sshfl [vmem:[#allocation1] sm:$0xff pattern:$0x75316420]  ;;  %v352_v30 = vld.sshfl [vmem:[#allocation1 + $0x8] sm:$0xff pattern:$0x75316420] }
  0xa6   : > { %v355_v31 = vsel %vm225_vm0, %v351_v29, 0.0  ;;  %v356_v32 = vsel %vm225_vm0, %v352_v30, 0.0  ;;  %367 = vst [vmem:[#allocation1] ss:$2 sm:$0xff] %v365_v28 }
  0xa7   : > { %v357_v33 = vadd.f32 %v356_v32, %v355_v31 }
  0xa9   : > { %358 = vadd.xlane.f32.xlu0 %v357_v33 }
  0xad   : > { %v368_v40 = vld.sshfl [vmem:[#allocation1] sm:$0xff pattern:$0x75316420]  ;;  %v369_v41 = vld.sshfl [vmem:[#allocation1 + $0x8] sm:$0xff pattern:$0x75316420] }
  0xae   : > { %v372_v42 = vsel %vm225_vm0, %v368_v40, 0.0  ;;  %v373_v43 = vsel %vm225_vm0, %v369_v41, 0.0  ;;  %380 = vst [vmem:[#allocation1] ss:$2 sm:$0xff] %v378_v39 }
  0xaf   : > { %v374_v44 = vadd.f32 %v373_v43, %v372_v42 }
  0xb1   : > { %375 = vadd.xlane.f32.xlu1 %v374_v44 }
  0xb5   : > { %v381_v47 = vld.sshfl [vmem:[#allocation1] sm:$0xff pattern:$0x75316420]  ;;  %v382_v48 = vld.sshfl [vmem:[#allocation1 + $0x8] sm:$0xff pattern:$0x75316420] }
  0xb6   : > { %v385_v49 = vsel %vm225_vm0, %v381_v47, 0.0  ;;  %v386_v50 = vsel %vm225_vm0, %v382_v48, 0.0  ;;  %393 = vst [vmem:[#allocation1] ss:$2 sm:$0xff] %v391_v46 }
  0xb7   : > { %v387_v51 = vadd.f32 %v386_v50, %v385_v49 }
  0xb9   : > { %388 = vadd.xlane.f32.xlu1 %v387_v51 }
  0xbd   : > { %v394_v52 = vld.sshfl [vmem:[#allocation1] sm:$0xff pattern:$0x75316420]  ;;  %v395_v53 = vld.sshfl [vmem:[#allocation1 + $0x8] sm:$0xff pattern:$0x75316420] }
  0xbe   : > { %v398_v54 = vsel %vm225_vm0, %v394_v52, 0.0  ;;  %v399_v55 = vsel %vm225_vm0, %v395_v53, 0.0 }
  0xbf   : > { %v400_v56 = vadd.f32 %v399_v55, %v398_v54 }
  0xc1   : > { %401 = vadd.xlane.f32.xlu2 %v400_v56 }
 0x11c   : > { %v359_v57 = vpop.xlane.xlu0 %358 }
 0x11d   : > { %536 = vrcp.f32 %v359_v57 }
 0x123   : > { %v537_v59 = vpop.eup %536 }
 0x124   : > { %v376_v58 = vpop.xlane.xlu1 %375  ;;  %v361_v60 = vmul.f32 %v537_v59, %v359_v57 }
 0x126   : > { %v362_v61 = vsub.f32 2.0, %v361_v60 }
 0x128   : > { %v363_v63 = vmul.f32 %v537_v59, %v362_v61 }
 0x12c   : > { %v389_v62 = vpop.xlane.xlu1 %388 }
 0x12d   : > { %v404_v0 = vsel %vm403_vm1, %v376_v58, %v389_v62 }
 0x134   : > { %v402_v1 = vpop.xlane.xlu2 %401 }
 0x135   : > { %v406_v2 = vsel %vm405_vm2, %v404_v0, %v402_v1 }
 0x136   : > { %v407_v3 = vmul.f32 %v406_v2, %v363_v63 }
 0x138   : > { %409 = vst.msk [vmem:[%s205_s23] sm:$0xf] %vm408_vm3, %v407_v3 }
 0x139 PF: > { %s12_s11 = sadd.s32 1, %s560_s11   ;;  %s634_s9 = smov %s556_s10 }
 0x13a   : > { %p9_p5 = scmp.ge.s32.totalorder %s12_s11, 4   ;;  %s635_s10 = smov %s637_s12 }
 0x13c   :  { %11 = sbr.rel (!%p9_p5) target bundleno = 2 (0x2), region = 73 }

</bundles_post_ra>
